<compile_context>
chip_gen: v7x
topology: tpu7x:2x2x1
jax: 0.10.0
libtpu: 0.0.40
codegen_flags: <defaults>
</compile_context>

<pallas_src>
import functools

import jax
import jax.numpy as jnp
from jax.experimental import pallas as pl
from jax.experimental.pallas import tpu as pltpu


def set2set_kernel(x_ref, batch_ref, wqh_ref, wihr_ref, b_ref, out_ref, *,
                   processing_steps: int, num_graphs: int):
    x = x_ref[...].astype(jnp.float32)        # (N, D)   node features (2 vregs here)
    batch_i = batch_ref[...]                  # (N, 1)   int32 graph id per node
    b = b_ref[...]                            # (1, 4D)  combined bias (b_ih + b_hh)

    N, D = x.shape
    B = num_graphs

    # ---- loop-invariant: membership mask built in-kernel (hoisted) ----
    mask = jax.lax.broadcasted_iota(jnp.int32, (N, B), 1) == batch_i    # (N, B) bool
    mask_f = mask.astype(jnp.float32)                                   # (N, B)

    # ---- processing step 0 LSTM: all states are zero -> gates == bias exactly ----
    i0 = jax.nn.sigmoid(b[:, 0 * D:1 * D])
    g0 = jnp.tanh(b[:, 2 * D:3 * D])
    o0 = jax.nn.sigmoid(b[:, 3 * D:4 * D])
    c0 = i0 * g0                              # f0 * c_prev == 0
    h0 = o0 * jnp.tanh(c0)
    c = jnp.broadcast_to(c0, (B, D))          # (B, D)
    h = jnp.broadcast_to(h0, (B, D))          # (B, D)

    def attention(q):
        # scores[n, g] = <x_n, q_g> on the MXU
        scores = jax.lax.dot_general(x, q, (((1,), (1,)), ((), ())),
                                     preferred_element_type=jnp.float32)  # (N, B)
        e_masked = jnp.where(mask, scores, -1e30)                         # (N, B)
        seg_max = jnp.max(e_masked, axis=0, keepdims=True)                # (1, B)
        p = jnp.exp(e_masked - seg_max)                                   # (N, B)
        seg_sum = jnp.sum(mask_f * p, axis=0, keepdims=True)              # (1, B)
        # For non-empty graphs seg_sum >= 1 (exp(0) term is present), so clamping
        # only affects empty graphs, whose attention column is zeroed by mask_f.
        s_safe = jnp.maximum(seg_sum, 1.0)
        inv = pl.reciprocal(s_safe, approx=True)                          # EUP slot
        inv = inv * (2.0 - s_safe * inv)                                  # 1 NR step
        attn = (mask_f * p) * inv                                         # (N, B)
        # readout: r_g = sum_n attn[n, g] * x_n  (single MXU matmul, K = N)
        return jax.lax.dot_general(attn, x, (((0,), (0,)), ((), ())),
                                   preferred_element_type=jnp.float32)    # (B, D)

    r = attention(h)                          # step 0 attention (q == h)

    for _ in range(processing_steps - 1):     # steps 1..P-1, fully unrolled
        # LSTM cell exploiting q_prev == h:  gates = h @ (Wih_q + Whh) + r @ Wih_r + b
        # Weight refs read at point of use (no live ranges across unrolled steps).
        gates = (jnp.dot(h, wqh_ref[...], preferred_element_type=jnp.float32)
                 + jnp.dot(r, wihr_ref[...], preferred_element_type=jnp.float32)
                 + b)                                                     # (B, 4D)
        i_g = jax.nn.sigmoid(gates[:, 0 * D:1 * D])
        f_g = jax.nn.sigmoid(gates[:, 1 * D:2 * D])
        g_g = jnp.tanh(gates[:, 2 * D:3 * D])
        o_g = jax.nn.sigmoid(gates[:, 3 * D:4 * D])
        c = f_g * c + i_g * g_g
        h = o_g * jnp.tanh(c)
        r = attention(h)

    # Single lane-axis concatenate, only for the final lane-dense (B, 2D) store.
    out_ref[...] = jnp.concatenate([h, r], axis=-1).astype(out_ref.dtype)


def relation_gnn_forward(x, batch, params, *, num_graphs, processing_steps=2):
    """Mirrors RelationGNN.forward: returns (graph_embedding, x)."""
    n, d = x.shape
    batch_col = batch.astype(jnp.int32).reshape(n, 1)    # (N, 1) int32 -> VMEM
    # TODO(synk): for non-toy N, tile x over N with a BlockSpec grid (two-pass or
    # online segment-softmax) so DMA overlaps compute and the grid can shard across
    # both v7x TensorCores; at these shapes everything fits comfortably in VMEM.
    graph_embedding = pl.pallas_call(
        functools.partial(set2set_kernel,
                          processing_steps=processing_steps,
                          num_graphs=num_graphs),
        out_shape=jax.ShapeDtypeStruct((num_graphs, 2 * d), jnp.float32),
        in_specs=[pl.BlockSpec(memory_space=pltpu.MemorySpace.VMEM)] * 5,
        out_specs=pl.BlockSpec(memory_space=pltpu.MemorySpace.VMEM),
        compiler_params=pltpu.CompilerParams(vmem_limit_bytes=32 * 1024 * 1024),
    )(x, batch_col, params["w_qh_t"], params["w_ih_r_t"], params["bias"])
    return graph_embedding, x


def init_params(key, node_feature_dim):
    """Deterministic synthetic LSTM params (shapes match nn.LSTM(2D, D, 1))."""
    d = node_feature_dim
    k1, k2, k3, k4 = jax.random.split(key, 4)
    bound = 1.0 / (d ** 0.5)
    w_ih = jax.random.uniform(k1, (4 * d, 2 * d), jnp.float32, -bound, bound)
    w_hh = jax.random.uniform(k2, (4 * d, d), jnp.float32, -bound, bound)
    b_ih = jax.random.uniform(k3, (4 * d,), jnp.float32, -bound, bound)
    b_hh = jax.random.uniform(k4, (4 * d,), jnp.float32, -bound, bound)
    w_ih_t = w_ih.T                             # (2D, 4D)
    w_hh_t = w_hh.T                             # (D, 4D)
    return {
        "w_ih_t": w_ih_t,                       # full, for the pure-JAX reference
        "w_hh_t": w_hh_t,                       # for the pure-JAX reference
        "w_qh_t": w_ih_t[:d] + w_hh_t,          # (D, 4D)  fused q-half + hidden (kernel)
        "w_ih_r_t": w_ih_t[d:],                 # (D, 4D)  r-half (kernel)
        "bias": (b_ih + b_hh)[None, :],         # (1, 4D)
    }


def _reference_set2set(x, batch, params, num_graphs, processing_steps=2):
    """Pure-JAX reference (same math as torch_geometric Set2Set) for correctness."""
    n, d = x.shape
    q_star = jnp.zeros((num_graphs, 2 * d), jnp.float32)
    h = jnp.zeros((num_graphs, d), jnp.float32)
    c = jnp.zeros((num_graphs, d), jnp.float32)
    for _ in range(processing_steps):
        gates = q_star @ params["w_ih_t"] + h @ params["w_hh_t"] + params["bias"]
        i_g = jax.nn.sigmoid(gates[:, :d])
        f_g = jax.nn.sigmoid(gates[:, d:2 * d])
        g_g = jnp.tanh(gates[:, 2 * d:3 * d])
        o_g = jax.nn.sigmoid(gates[:, 3 * d:])
        c = f_g * c + i_g * g_g
        h = o_g * jnp.tanh(c)
        q = h
        e = jnp.sum(x * q[batch], axis=-1)                         # (N,)
        seg_max = jax.ops.segment_max(e, batch, num_graphs)
        exp_e = jnp.exp(e - seg_max[batch])
        seg_sum = jax.ops.segment_sum(exp_e, batch, num_graphs)
        a = exp_e / seg_sum[batch]
        r = jax.ops.segment_sum(a[:, None] * x, batch, num_graphs)
        q_star = jnp.concatenate([q, r], axis=-1)
    return q_star


if __name__ == "__main__":
    # Small shapes consistent with the module: N nodes, D node features, B graphs.
    N, D, B = 16, 128, 2

    key = jax.random.PRNGKey(0)
    kx, kp = jax.random.split(key)
    x = jax.random.normal(kx, (N, D), jnp.float32)
    batch = jnp.array([0] * 10 + [1] * 6, jnp.int32)       # graph assignment per node
    params = init_params(kp, D)

    graph_embedding, x_out = relation_gnn_forward(x, batch, params, num_graphs=B)
    jax.block_until_ready(graph_embedding)
    jax.block_until_ready(x_out)

    assert graph_embedding.shape == (B, 2 * D)
    assert x_out.shape == (N, D)

    ref = _reference_set2set(x, batch, params, B)
    assert jnp.allclose(graph_embedding, ref, rtol=1e-4, atol=1e-4), "mismatch vs reference"
    assert jnp.array_equal(x_out, x), "x must be returned unchanged"

    print("KERNEL_OK")
</pallas_src>

<mosaic_0001>
module attributes {stable_mosaic.version = 11 : i64} {
  func.func @set2set_kernel(%arg0: memref<16x128xf32, #tpu.memory_space<vmem>>, %arg1: memref<16x1xi32, #tpu.memory_space<vmem>>, %arg2: memref<128x512xf32, #tpu.memory_space<vmem>>, %arg3: memref<128x512xf32, #tpu.memory_space<vmem>>, %arg4: memref<1x512xf32, #tpu.memory_space<vmem>>, %arg5: memref<2x256xf32, #tpu.memory_space<vmem>>) attributes {dimension_semantics = [], scalar_prefetch = 0 : i64, scratch_operands = 0 : i64, tpu.core_type = #tpu.core_type<tc>} {
    %c0 = arith.constant 0 : index
    %c0_0 = arith.constant 0 : index
    %0 = vector.load %arg0[%c0, %c0_0] : memref<16x128xf32, #tpu.memory_space<vmem>>, vector<16x128xf32>
    %c0_1 = arith.constant 0 : index
    %c0_2 = arith.constant 0 : index
    %1 = vector.load %arg1[%c0_1, %c0_2] : memref<16x1xi32, #tpu.memory_space<vmem>>, vector<16x1xi32>
    %c0_3 = arith.constant 0 : index
    %c0_4 = arith.constant 0 : index
    %2 = vector.load %arg4[%c0_3, %c0_4] : memref<1x512xf32, #tpu.memory_space<vmem>>, vector<1x512xf32>
    %3 = tpu.iota {dimensions = array<i32: 1>} : vector<16x2xi32>
    %4 = vector.broadcast %1 : vector<16x1xi32> to vector<16x2xi32>
    %5 = arith.cmpi eq, %3, %4 : vector<16x2xi32>
    %6 = arith.extui %5 : vector<16x2xi1> to vector<16x2xi32>
    %7 = arith.sitofp %6 : vector<16x2xi32> to vector<16x2xf32>
    %8 = vector.extract_strided_slice %2 {offsets = [0, 0], sizes = [1, 128], strides = [1, 1]} : vector<1x512xf32> to vector<1x128xf32>
    %9 = arith.negf %8 : vector<1x128xf32>
    %10 = math.exp %9 : vector<1x128xf32>
    %cst = arith.constant 1.000000e+00 : f32
    %11 = vector.broadcast %cst : f32 to vector<1x128xf32>
    %12 = arith.addf %11, %10 : vector<1x128xf32>
    %13 = arith.divf %11, %12 : vector<1x128xf32>
    %14 = vector.extract_strided_slice %2 {offsets = [0, 256], sizes = [1, 128], strides = [1, 1]} : vector<1x512xf32> to vector<1x128xf32>
    %15 = math.tanh %14 : vector<1x128xf32>
    %16 = vector.extract_strided_slice %2 {offsets = [0, 384], sizes = [1, 128], strides = [1, 1]} : vector<1x512xf32> to vector<1x128xf32>
    %17 = arith.negf %16 : vector<1x128xf32>
    %18 = math.exp %17 : vector<1x128xf32>
    %cst_5 = arith.constant 1.000000e+00 : f32
    %19 = vector.broadcast %cst_5 : f32 to vector<1x128xf32>
    %20 = arith.addf %19, %18 : vector<1x128xf32>
    %21 = arith.divf %19, %20 : vector<1x128xf32>
    %22 = arith.mulf %13, %15 : vector<1x128xf32>
    %23 = math.tanh %22 : vector<1x128xf32>
    %24 = arith.mulf %21, %23 : vector<1x128xf32>
    %25 = vector.shape_cast %22 : vector<1x128xf32> to vector<1x128xf32>
    %26 = vector.broadcast %25 : vector<1x128xf32> to vector<2x128xf32>
    %27 = vector.shape_cast %24 : vector<1x128xf32> to vector<1x128xf32>
    %28 = vector.broadcast %27 : vector<1x128xf32> to vector<2x128xf32>
    %cst_6 = arith.constant dense<0.000000e+00> : vector<16x2xf32>
    %29 = tpu.matmul %0, %28, %cst_6 {dimension_numbers = #tpu.dot_dimension_numbers<[1], [1], [0], [0], [0, 0, 1, 0], [], []>} : vector<16x128xf32>, vector<2x128xf32>, vector<16x2xf32> -> vector<16x2xf32>
    %cst_7 = arith.constant -1.000000e+30 : f32
    %30 = vector.broadcast %cst_7 : f32 to vector<16x2xf32>
    %31 = arith.select %5, %29, %30 : vector<16x2xi1>, vector<16x2xf32>
    %cst_8 = arith.constant dense<0xFF800000> : vector<2xf32>
    %32 = vector.multi_reduction <maximumf>, %31, %cst_8 [0] : vector<16x2xf32> to vector<2xf32>
    %33 = vector.shape_cast %32 : vector<2xf32> to vector<1x2xf32>
    %34 = vector.broadcast %33 : vector<1x2xf32> to vector<16x2xf32>
    %35 = arith.subf %31, %34 : vector<16x2xf32>
    %36 = math.exp %35 : vector<16x2xf32>
    %37 = arith.mulf %7, %36 : vector<16x2xf32>
    %cst_9 = arith.constant dense<0.000000e+00> : vector<2xf32>
    %38 = vector.multi_reduction <add>, %37, %cst_9 [0] : vector<16x2xf32> to vector<2xf32>
    %39 = vector.shape_cast %38 : vector<2xf32> to vector<1x2xf32>
    %cst_10 = arith.constant 1.000000e+00 : f32
    %40 = vector.broadcast %cst_10 : f32 to vector<1x2xf32>
    %41 = arith.maximumf %39, %40 : vector<1x2xf32>
    %42 = tpu.reciprocal %41 {approx = true} : vector<1x2xf32> -> vector<1x2xf32>
    %43 = arith.mulf %41, %42 : vector<1x2xf32>
    %cst_11 = arith.constant 2.000000e+00 : f32
    %44 = vector.broadcast %cst_11 : f32 to vector<1x2xf32>
    %45 = arith.subf %44, %43 : vector<1x2xf32>
    %46 = arith.mulf %42, %45 : vector<1x2xf32>
    %47 = arith.mulf %7, %36 : vector<16x2xf32>
    %48 = vector.broadcast %46 : vector<1x2xf32> to vector<16x2xf32>
    %49 = arith.mulf %47, %48 : vector<16x2xf32>
    %cst_12 = arith.constant dense<0.000000e+00> : vector<2x128xf32>
    %50 = tpu.matmul %49, %0, %cst_12 {dimension_numbers = #tpu.dot_dimension_numbers<[0], [0], [1], [1], [0, 1, 1, 1], [], []>} : vector<16x2xf32>, vector<16x128xf32>, vector<2x128xf32> -> vector<2x128xf32>
    %c0_13 = arith.constant 0 : index
    %c0_14 = arith.constant 0 : index
    %51 = vector.load %arg2[%c0_13, %c0_14] : memref<128x512xf32, #tpu.memory_space<vmem>>, vector<128x512xf32>
    %cst_15 = arith.constant dense<0.000000e+00> : vector<2x512xf32>
    %52 = tpu.matmul %28, %51, %cst_15 {dimension_numbers = #tpu.dot_dimension_numbers<[1], [0], [0], [1], [0, 0, 1, 1], [], []>} : vector<2x128xf32>, vector<128x512xf32>, vector<2x512xf32> -> vector<2x512xf32>
    %c0_16 = arith.constant 0 : index
    %c0_17 = arith.constant 0 : index
    %53 = vector.load %arg3[%c0_16, %c0_17] : memref<128x512xf32, #tpu.memory_space<vmem>>, vector<128x512xf32>
    %cst_18 = arith.constant dense<0.000000e+00> : vector<2x512xf32>
    %54 = tpu.matmul %50, %53, %cst_18 {dimension_numbers = #tpu.dot_dimension_numbers<[1], [0], [0], [1], [0, 0, 1, 1], [], []>} : vector<2x128xf32>, vector<128x512xf32>, vector<2x512xf32> -> vector<2x512xf32>
    %55 = arith.addf %52, %54 : vector<2x512xf32>
    %56 = vector.broadcast %2 : vector<1x512xf32> to vector<2x512xf32>
    %57 = arith.addf %55, %56 : vector<2x512xf32>
    %58 = vector.extract_strided_slice %57 {offsets = [0, 0], sizes = [2, 128], strides = [1, 1]} : vector<2x512xf32> to vector<2x128xf32>
    %59 = arith.negf %58 : vector<2x128xf32>
    %60 = math.exp %59 : vector<2x128xf32>
    %cst_19 = arith.constant 1.000000e+00 : f32
    %61 = vector.broadcast %cst_19 : f32 to vector<2x128xf32>
    %62 = arith.addf %61, %60 : vector<2x128xf32>
    %63 = arith.divf %61, %62 : vector<2x128xf32>
    %64 = vector.extract_strided_slice %57 {offsets = [0, 128], sizes = [2, 128], strides = [1, 1]} : vector<2x512xf32> to vector<2x128xf32>
    %65 = arith.negf %64 : vector<2x128xf32>
    %66 = math.exp %65 : vector<2x128xf32>
    %cst_20 = arith.constant 1.000000e+00 : f32
    %67 = vector.broadcast %cst_20 : f32 to vector<2x128xf32>
    %68 = arith.addf %67, %66 : vector<2x128xf32>
    %69 = arith.divf %67, %68 : vector<2x128xf32>
    %70 = vector.extract_strided_slice %57 {offsets = [0, 256], sizes = [2, 128], strides = [1, 1]} : vector<2x512xf32> to vector<2x128xf32>
    %71 = math.tanh %70 : vector<2x128xf32>
    %72 = vector.extract_strided_slice %57 {offsets = [0, 384], sizes = [2, 128], strides = [1, 1]} : vector<2x512xf32> to vector<2x128xf32>
    %73 = arith.negf %72 : vector<2x128xf32>
    %74 = math.exp %73 : vector<2x128xf32>
    %cst_21 = arith.constant 1.000000e+00 : f32
    %75 = vector.broadcast %cst_21 : f32 to vector<2x128xf32>
    %76 = arith.addf %75, %74 : vector<2x128xf32>
    %77 = arith.divf %75, %76 : vector<2x128xf32>
    %78 = arith.mulf %69, %26 : vector<2x128xf32>
    %79 = arith.mulf %63, %71 : vector<2x128xf32>
    %80 = arith.addf %78, %79 : vector<2x128xf32>
    %81 = math.tanh %80 : vector<2x128xf32>
    %82 = arith.mulf %77, %81 : vector<2x128xf32>
    %cst_22 = arith.constant dense<0.000000e+00> : vector<16x2xf32>
    %83 = tpu.matmul %0, %82, %cst_22 {dimension_numbers = #tpu.dot_dimension_numbers<[1], [1], [0], [0], [0, 0, 1, 0], [], []>} : vector<16x128xf32>, vector<2x128xf32>, vector<16x2xf32> -> vector<16x2xf32>
    %cst_23 = arith.constant -1.000000e+30 : f32
    %84 = vector.broadcast %cst_23 : f32 to vector<16x2xf32>
    %85 = arith.select %5, %83, %84 : vector<16x2xi1>, vector<16x2xf32>
    %cst_24 = arith.constant dense<0xFF800000> : vector<2xf32>
    %86 = vector.multi_reduction <maximumf>, %85, %cst_24 [0] : vector<16x2xf32> to vector<2xf32>
    %87 = vector.shape_cast %86 : vector<2xf32> to vector<1x2xf32>
    %88 = vector.broadcast %87 : vector<1x2xf32> to vector<16x2xf32>
    %89 = arith.subf %85, %88 : vector<16x2xf32>
    %90 = math.exp %89 : vector<16x2xf32>
    %91 = arith.mulf %7, %90 : vector<16x2xf32>
    %cst_25 = arith.constant dense<0.000000e+00> : vector<2xf32>
    %92 = vector.multi_reduction <add>, %91, %cst_25 [0] : vector<16x2xf32> to vector<2xf32>
    %93 = vector.shape_cast %92 : vector<2xf32> to vector<1x2xf32>
    %cst_26 = arith.constant 1.000000e+00 : f32
    %94 = vector.broadcast %cst_26 : f32 to vector<1x2xf32>
    %95 = arith.maximumf %93, %94 : vector<1x2xf32>
    %96 = tpu.reciprocal %95 {approx = true} : vector<1x2xf32> -> vector<1x2xf32>
    %97 = arith.mulf %95, %96 : vector<1x2xf32>
    %cst_27 = arith.constant 2.000000e+00 : f32
    %98 = vector.broadcast %cst_27 : f32 to vector<1x2xf32>
    %99 = arith.subf %98, %97 : vector<1x2xf32>
    %100 = arith.mulf %96, %99 : vector<1x2xf32>
    %101 = arith.mulf %7, %90 : vector<16x2xf32>
    %102 = vector.broadcast %100 : vector<1x2xf32> to vector<16x2xf32>
    %103 = arith.mulf %101, %102 : vector<16x2xf32>
    %cst_28 = arith.constant dense<0.000000e+00> : vector<2x128xf32>
    %104 = tpu.matmul %103, %0, %cst_28 {dimension_numbers = #tpu.dot_dimension_numbers<[0], [0], [1], [1], [0, 1, 1, 1], [], []>} : vector<16x2xf32>, vector<16x128xf32>, vector<2x128xf32> -> vector<2x128xf32>
    %105 = tpu.concatenate %82, %104 in 1 : vector<2x128xf32>, vector<2x128xf32> -> vector<2x256xf32>
    %c0_29 = arith.constant 0 : index
    %c0_30 = arith.constant 0 : index
    %106 = vector.load %arg5[%c0_29, %c0_30] : memref<2x256xf32, #tpu.memory_space<vmem>>, vector<2x256xf32>
    tpu.vector_store %arg5[%c0_29, %c0_30], %105 {strides = array<i32>} : memref<2x256xf32, #tpu.memory_space<vmem>>, vector<2x256xf32>,
    return
  }
}

</mosaic_0001>

<bundles_post_ra>
// kernel: tpu_custom_call.1
= control target key start
LH: loop header
LB: loop body
LE: loop exit
PB: predicated region body
PF: predicated region fallthrough
CT: control target
= control target key end

     0   :  { %10 = vsyncpa [#allocation3], 0  ;;  %s1519_s0 = inlined_call_operand.vmem [shape: f32[16,128], index: 0, kind: input, shape index: {}]   ;;  %s1520_s1 = inlined_call_operand.vmem [shape: s32[16,1], index: 1, kind: input, shape index: {}]   ;;  %s1521_s2 = inlined_call_operand.hbm [shape: f32[128,512], index: 2, kind: input, shape index: {}]   ;;  %s1522_s3 = inlined_call_operand.hbm [shape: f32[128,512], index: 3, kind: input, shape index: {}]   ;;  %s1523_s4 = inlined_call_operand.vmem [shape: f32[1,512], index: 4, kind: input, shape index: {}]   ;;  %s1524_s5 = inlined_call_operand.hbm [shape: f32[2,256], index: 5, kind: output, shape index: {}]  }
   0x1   :  { %11 = vsyncpa [#allocation6], 0 }
   0x2   :  { %12 = vsyncpa [#allocation4], 0  ;;  %s1327_s18 = smov [#allocation2]   ;;  %s1255_s22 = scalar_lea.hbm %s1521_s2, 8192 }
   0x3   :  { %s22_s19 = sshll.u32 %s1327_s18, 4  ;;  %p1256_p0 = scmp.ne.s32.totalorder %s1521_s2, %s1255_s22  ;;  %s23_s19 = int_to_ptr.vmem [resolvable:$true] %s22_s19 }
   0x4   :  { %p1259_p1 = scmp.lt.u32.totalorder %s1255_s22, %s1521_s2 }
   0x6   :  { %p1261_p2 = pnand %p1259_p1, %p1256_p0 }
   0x8   :  { %1264 = shalt.err (!%p1261_p2)
}
   0x9   :  { %s1265_s27 = scalar_lea.vmem %s23_s19, 8192  ;;  %p1270_p4 = scmp.lt.s32.totalorder %s23_s19, %s23_s19 }
   0xa   :  { %p1266_p3 = scmp.ne.s32.totalorder %s23_s19, %s1265_s27  ;;  %p1271_p5 = scmp.lt.s32.totalorder %s1265_s27, %s1265_s27 }
   0xc   :  { %p1272_p6 = por %p1271_p5, %p1270_p4 }
   0xe   :  { %p1273_p7 = pnand %p1272_p6, %p1266_p3 }
  0x10   :  { %1276 = shalt.err (!%p1273_p7)
}
  0x11   :  { %s1328_s28 = smov 512   ;;  %s1329_s29 = smov 32  }
  0x12   :  { %28 = dma.hbm_to_vmem [thread:$0]  %s1521_s2, 8192, %s23_s19, [#allocation3], %s1328_s28, %s1328_s28, %s1329_s29  }
  0x13   :  { %s1330_s7 = smov [#allocation5]   ;;  %s1277_s11 = scalar_lea.hbm %s1522_s3, 8192 }
  0x14   :  { %s34_s8 = sshll.u32 %s1330_s7, 4  ;;  %p1278_p8 = scmp.ne.s32.totalorder %s1522_s3, %s1277_s11  ;;  %s35_s8 = int_to_ptr.vmem [resolvable:$true] %s34_s8 }
  0x15   :  { %p1281_p9 = scmp.lt.u32.totalorder %s1277_s11, %s1522_s3 }
  0x17   :  { %p1283_p10 = pnand %p1281_p9, %p1278_p8 }
  0x19   :  { %1286 = shalt.err (!%p1283_p10)
}
  0x1a   :  { %s1287_s16 = scalar_lea.vmem %s35_s8, 8192  ;;  %p1292_p12 = scmp.lt.s32.totalorder %s35_s8, %s35_s8 }
  0x1b   :  { %p1288_p11 = scmp.ne.s32.totalorder %s35_s8, %s1287_s16  ;;  %p1293_p13 = scmp.lt.s32.totalorder %s1287_s16, %s1287_s16 }
  0x1d   :  { %p1294_p0 = por %p1293_p13, %p1292_p12 }
  0x1f   :  { %p1295_p1 = pnand %p1294_p0, %p1288_p11 }
  0x21   :  { %1298 = shalt.err (!%p1295_p1)
}
  0x22   :  { %40 = dma.hbm_to_vmem [thread:$0]  %s1522_s3, 8192, %s35_s8, [#allocation6], %s1328_s28, %s1328_s28, %s1329_s29  }
  0x23   :  { %1321 = dma.done.wait [#allocation3], 8192  }
  0x24   :  { %1322 = vsyncadd [#allocation3], 4294959104 }
  0x25   :  { %1323 = dma.done.wait [#allocation6], 8192  }
  0x26   :  { %1324 = vsyncadd [#allocation6], 4294959104  ;;  %v1331_v0 = vmov 0   ;;  %v1393_v1 = vld [vmem:[%s1523_s4] sm:$0xf]  ;;  %v52_v6 = vld [vmem:[%s1520_s1 + $0x8] sm:$0xff]  ;;  %v54_v16 = vlaneseq }
  0x27   :  { %1214 = vset.pattern.permute.xlu0 %v1331_v0  ;;  %v1398_v2 = vld [vmem:[%s1519_s0] sm:$0xff]  ;;  %v1023_v3 = vmul.f32 -1.442695, %v1393_v1  ;;  %v78_v5 = vrot.slane %v1393_v1, 3  ;;  %v75_v8 = vrot.slane %v1393_v1, 2  ;;  %v1426_v23 = vld [vmem:[%s1519_s0 + $0x8] sm:$0xff] }
  0x28   :  { %1045 = vmatprep.mubr.f32.mxu0 %v1398_v2  ;;  %v51_v4 = vld [vmem:[%s1520_s1] sm:$0xff]  ;;  %v1413_v17 = vshrl.u32 %v54_v16, 7  ;;  %v1332_v24 = vmov 0.0   ;;  %v1432_v25 = vpack.c.bf16 %v1426_v23, %v1398_v2  ;;  %v1333_v26 = vmov 0.0|0.0   ;;  %s1335_s0 = smov [#allocation7]  }
  0x29   :  { %57 = vperm.xlu0 %1214, %v51_v4   ;;  %1215 = vpow2.f32 %v1023_v3  ;;  %v1024_v7 = vmul.f32 -1.442695, %v78_v5  ;;  %1067 = vmatprep.subr.bf16.mxu1 %v1333_v26  ;;  %vm1334_vm0 = vmmov 0   ;;  %v1440_v28 = vand.u32 127, %v54_v16  ;;  %s1011_s25 = sshll.u32 %s1335_s0, 4  ;;  %s1012_s25 = int_to_ptr.vmem [resolvable:$true] %s1011_s25 }
  0x2a   :  { %v1416_v19 = vsub.s32 0, %v1413_v17  ;;  %1052 = vmatprep.mubr.msk.f32.mxu1 %vm1334_vm0, %v1332_v24  ;;  %1069 = vmatpush3.bf16.msra.mxu1 %v1432_v25  ;;  %vm178_vm1 = vcmask 15360   ;;  %vm244_vm4 = vcmask 130048   ;;  %s1299_s26 = scalar_lea.vmem %s1012_s25, 64  ;;  %p1304_p3 = scmp.lt.s32.totalorder %s1012_s25, %s1012_s25 }
  0x2b   :  { %1217 = vpow2.f32 %v1024_v7  ;;  %v383_v7 = vld [vmem:[#allocation5 + $0x8] sm:$0xff]  ;;  %p1300_p2 = scmp.ne.s32.totalorder %s1012_s25, %s1299_s26  ;;  %p1305_p4 = scmp.lt.s32.totalorder %s1299_s26, %s1299_s26 }
  0x2c   :  { %1219 = vtanh.f32 %v75_v8  ;;  %v387_v8 = vld [vmem:[#allocation5 + $0x28] sm:$0xff] }
  0x2d   :  { %60 = vperm.xlu0 %1214, %v52_v6   ;;  %p1306_p5 = por %p1305_p4, %p1304_p3 }
  0x2f   :  { %p1307_p6 = pnand %p1306_p5, %p1300_p2 }
  0x33   :  { %v1216_v9 = vpop.eup %1215 }
  0x34   :  { %v71_v10 = vadd.f32 1.0, %v1216_v9  ;;  %v385_v9 = vld [vmem:[#allocation5 + $0x18] sm:$0xff] }
  0x35   :  { %v1218_v11 = vpop.eup %1217 }
  0x36   :  { %1221 = vrcp.f32 %v71_v10  ;;  %v83_v12 = vadd.f32 1.0, %v1218_v11  ;;  %v1220_v13 = vpop.eup %1219  ;;  %v1070_v10 = vpack.c.bf16 %v387_v8, %v383_v7  ;;  %v389_v11 = vld [vmem:[#allocation5 + $0x38] sm:$0xff]  ;;  %v442_v7 = vld [vmem:[#allocation5 + $0x1e0] sm:$0xff] }
  0x38   :  { %1223 = vrcp.f32 %v83_v12  ;;  %v382_v12 = vld [vmem:[#allocation5] sm:$0xff] }
  0x40   :  { %v1222_v14 = vpop.eup %1221 }
  0x41   :  { %v1410_v15 = vmul.f32 %v1222_v14, %v1220_v13  ;;  %v386_v13 = vld [vmem:[#allocation5 + $0x20] sm:$0xff]  ;;  %v1102_v14 = vpack.c.bf16 %v389_v11, %v385_v9  ;;  %v384_v9 = vld [vmem:[#allocation5 + $0x10] sm:$0xff]  ;;  %v393_v11 = vld [vmem:[#allocation5 + $0x58] sm:$0xff] }
  0x42   :  { %v1224_v18 = vpop.eup %1223  ;;  %v1072_v16 = vpack.c.bf16 %v386_v13, %v382_v12  ;;  %v397_v12 = vld [vmem:[#allocation5 + $0x78] sm:$0xff] }
  0x43   :  { %1225 = vtanh.f32 %v1410_v15  ;;  %1103 = vmatprep.subr.bf16.mxu1 %v1102_v14  ;;  %v1106_v14 = vpack.c.bf16 %v397_v12, %v393_v11  ;;  %v318_v12 = vld [vmem:[#allocation2] sm:$0xff] }
  0x4d   :  { %v1226_v20 = vpop.eup %1225 }
  0x4e   :  { %v88_v21 = vmul.f32 %v1226_v20, %v1224_v18  ;;  %v391_v18 = vld [vmem:[#allocation5 + $0x48] sm:$0xff] }
  0x4f   :  { %v395_v20 = vld [vmem:[#allocation5 + $0x68] sm:$0xff] }
  0x50   :  { %v1419_v22 = vrot.slane %v88_v21, %v1416_v19  ;;  %v1074_v21 = vpack.c.bf16 %v395_v20, %v391_v18  ;;  %v396_v18 = vld [vmem:[#allocation5 + $0x70] sm:$0xff] }
  0x52   :  { %1043 = vmatprep.subr.mxu0 %v1419_v22 }
  0x53   :  { %1044 = vmatpush3.xpose.msra.mxu0 %v1419_v22 }
  0x54   :  { %1071 = vmatprep.subr.bf16.mxu0 %v1070_v10  ;;  %v388_v10 = vld [vmem:[#allocation5 + $0x30] sm:$0xff] }
  0x55   :  { %v1104_v13 = vpack.c.bf16 %v388_v10, %v384_v9  ;;  %v325_v10 = vld [vmem:[#allocation2 + $0x38] sm:$0xff] }
  0x56   :  { %1046 = vmatmul.mubr.f32.vlgmr.msra.gmra.mrb[0].mxu0 %v1426_v23 }
  0x57   :  { %510 = vmatprep.mubr.f32.mxu0 %v1332_v24  ;;  %1073 = vmatpush1.bf16.msra.mxu0 %v1072_v16  ;;  %v392_v16 = vld [vmem:[#allocation5 + $0x50] sm:$0xff] }
  0x58   :  { %1075 = vmatprep.subr.bf16.mxu0 %v1074_v21  ;;  %v401_v21 = vld [vmem:[#allocation5 + $0x98] sm:$0xff] }
  0xa8   :  { %v1438_v27 = vpop.permute.xlu0 %57 }
  0xa9   :  { %vm62_vm3 = vcmp.eq.s32.totalorder %v1440_v28, %v1438_v27 }
  0xaa   :  { %v1460_v48 = vsel %vm62_vm3, 1.0, %v1332_v24 }
  0xac   :  { %v1442_v29 = vpop.permute.xlu0 %60 }
  0xad   :  { %vm63_vm2 = vcmp.eq.s32.totalorder %v1440_v28, %v1442_v29 }
  0xae   :  { %v1466_v50 = vsel %vm63_vm2, 1.0, %v1332_v24 }
 0x129   :  { %v1047_v30 = vpop.f32.mrb[0].mxu0 }
 0x12a   :  { %v177_v31 = vsel %vm63_vm2, %v1047_v30, -1e+30  ;;  %v167_v32 = vpop.f32.mrb[1].mxu0  ;;  %v390_v30 = vld [vmem:[#allocation5 + $0x40] sm:$0xff] }
 0x12b   :  { %v180_v33 = vsel %vm178_vm1, %v177_v31, -inf  ;;  %v176_v34 = vsel %vm62_vm3, %v167_v32, -1e+30 }
 0x12c   :  { %v179_v35 = vsel %vm178_vm1, %v176_v34, -inf }
 0x12d   :  { %v181_v36 = vmax.f32 %v179_v35, %v180_v33  ;;  %v399_v33 = vld [vmem:[#allocation5 + $0x88] sm:$0xff] }
 0x12f   :  { %v182_v37 = vrot.slane %v181_v36, 4 }
 0x131   :  { %v183_v38 = vmax.f32 %v181_v36, %v182_v37  ;;  %v398_v36 = vld [vmem:[#allocation5 + $0x80] sm:$0xff] }
 0x132   :  { %v402_v37 = vld [vmem:[#allocation5 + $0xa0] sm:$0xff] }
 0x133   :  { %v184_v39 = vrot.slane %v183_v38, 2 }
 0x135   :  { %v185_v40 = vmax.f32 %v183_v38, %v184_v39  ;;  %v1080_v38 = vpack.c.bf16 %v402_v37, %v398_v36  ;;  %v407_v39 = vld [vmem:[#allocation5 + $0xc8] sm:$0xff]  ;;  %v413_v36 = vld [vmem:[#allocation5 + $0xf8] sm:$0xff] }
 0x137   :  { %v186_v41 = vrot.slane %v185_v40, 1 }
 0x139   :  { %v187_v42 = vmax.f32 %v185_v40, %v186_v41  ;;  %v411_v40 = vld [vmem:[#allocation5 + $0xe8] sm:$0xff] }
 0x13a   :  { %v1082_v41 = vpack.c.bf16 %v411_v40, %v407_v39  ;;  %v408_v39 = vld [vmem:[#allocation5 + $0xd0] sm:$0xff] }
 0x13b   :  { %v188_v43 = vsub.f32 %v176_v34, %v187_v42  ;;  %v189_v44 = vsub.f32 %v177_v31, %v187_v42  ;;  %v394_v31 = vld [vmem:[#allocation5 + $0x60] sm:$0xff]  ;;  %v403_v34 = vld [vmem:[#allocation5 + $0xa8] sm:$0xff]  ;;  %v412_v40 = vld [vmem:[#allocation5 + $0xf0] sm:$0xff] }
 0x13c   :  { %v1076_v32 = vpack.c.bf16 %v394_v31, %v390_v30  ;;  %v1078_v35 = vpack.c.bf16 %v403_v34, %v399_v33  ;;  %v406_v42 = vld [vmem:[#allocation5 + $0xc0] sm:$0xff]  ;;  %v405_v30 = vld [vmem:[#allocation5 + $0xb8] sm:$0xff]  ;;  %v1108_v31 = vpack.c.bf16 %v396_v18, %v392_v16  ;;  %v400_v33 = vld [vmem:[#allocation5 + $0x90] sm:$0xff] }
 0x13d   :  { %v190_v45 = vmul.f32 1.442695, %v188_v43  ;;  %v192_v46 = vmul.f32 1.442695, %v189_v44  ;;  %v410_v43 = vld [vmem:[#allocation5 + $0xe0] sm:$0xff]  ;;  %v404_v34 = vld [vmem:[#allocation5 + $0xb0] sm:$0xff] }
 0x13e   :  { %1077 = vmatpush1.bf16.msra.mxu0 %v1076_v32  ;;  %v1084_v44 = vpack.c.bf16 %v410_v43, %v406_v42  ;;  %v1110_v32 = vpack.c.bf16 %v405_v30, %v401_v21  ;;  %v1112_v37 = vpack.c.bf16 %v404_v34, %v400_v33  ;;  %v421_v42 = vld [vmem:[#allocation5 + $0x138] sm:$0xff]  ;;  %v1116_v43 = vpack.c.bf16 %v412_v40, %v408_v39  ;;  %v324_v16 = vld [vmem:[#allocation2 + $0x30] sm:$0xff]  ;;  %v327_v18 = vld [vmem:[#allocation2 + $0x48] sm:$0xff] }
 0x13f   :  { %1227 = vpow2.f32 %v190_v45  ;;  %1079 = vmatprep.subr.bf16.mxu0 %v1078_v35  ;;  %v415_v45 = vld [vmem:[#allocation5 + $0x108] sm:$0xff]  ;;  %v409_v35 = vld [vmem:[#allocation5 + $0xd8] sm:$0xff]  ;;  %v326_v33 = vld [vmem:[#allocation2 + $0x40] sm:$0xff] }
 0x140   :  { %1229 = vpow2.f32 %v192_v46  ;;  %v419_v46 = vld [vmem:[#allocation5 + $0x128] sm:$0xff]  ;;  %v329_v21 = vld [vmem:[#allocation2 + $0x58] sm:$0xff]  ;;  %v330_v34 = vld [vmem:[#allocation2 + $0x60] sm:$0xff] }
 0x141   :  { %v333_v30 = vld [vmem:[#allocation2 + $0x78] sm:$0xff]  ;;  %v335_v39 = vld [vmem:[#allocation2 + $0x88] sm:$0xff] }
 0x142   :  { %1081 = vmatpush1.bf16.msra.mxu0 %v1080_v38  ;;  %v1114_v38 = vpack.c.bf16 %v413_v36, %v409_v35  ;;  %v1170_v36 = vpack.c.bf16 %v333_v30, %v329_v21  ;;  %v363_v21 = vld [vmem:[#allocation2 + $0x168] sm:$0xff]  ;;  %v361_v30 = vld [vmem:[#allocation2 + $0x158] sm:$0xff] }
 0x143   :  { %1083 = vmatprep.subr.bf16.mxu0 %v1082_v41  ;;  %v417_v41 = vld [vmem:[#allocation5 + $0x118] sm:$0xff] }
 0x146   :  { %1085 = vmatpush1.bf16.msra.mxu0 %v1084_v44  ;;  %v1118_v44 = vpack.c.bf16 %v421_v42, %v417_v41  ;;  %v339_v41 = vld [vmem:[#allocation2 + $0xa8] sm:$0xff]  ;;  %v337_v42 = vld [vmem:[#allocation2 + $0x98] sm:$0xff] }
 0x149   :  { %v1228_v47 = vpop.eup %1227 }
 0x14a   :  { %v1230_v49 = vpop.eup %1229  ;;  %v194_v51 = vmul.f32 %v1228_v47, %v1460_v48  ;;  %v1086_v47 = vpack.c.bf16 %v419_v46, %v415_v45  ;;  %v416_v45 = vld [vmem:[#allocation5 + $0x110] sm:$0xff] }
 0x14b   :  { %v195_v52 = vmul.f32 %v1230_v49, %v1466_v50  ;;  %v414_v49 = vld [vmem:[#allocation5 + $0x100] sm:$0xff]  ;;  %v420_v46 = vld [vmem:[#allocation5 + $0x130] sm:$0xff] }
 0x14c   :  { %v196_v53 = vsel %vm178_vm1, %v194_v51, 0.0  ;;  %1087 = vmatprep.subr.bf16.mxu0 %v1086_v47  ;;  %v425_v47 = vld [vmem:[#allocation5 + $0x158] sm:$0xff] }
 0x14d   :  { %v197_v54 = vsel %vm178_vm1, %v195_v52, 0.0 }
 0x14e   :  { %v198_v55 = vadd.f32 %v197_v54, %v196_v53  ;;  %v423_v53 = vld [vmem:[#allocation5 + $0x148] sm:$0xff] }
 0x14f   :  { %v427_v54 = vld [vmem:[#allocation5 + $0x168] sm:$0xff] }
 0x150   :  { %v199_v56 = vrot.slane %v198_v55, 4 }
 0x152   :  { %v200_v57 = vadd.f32 %v199_v56, %v198_v55  ;;  %v1090_v55 = vpack.c.bf16 %v427_v54, %v423_v53  ;;  %v422_v56 = vld [vmem:[#allocation5 + $0x140] sm:$0xff]  ;;  %v424_v53 = vld [vmem:[#allocation5 + $0x150] sm:$0xff] }
 0x153   :  { %v428_v54 = vld [vmem:[#allocation5 + $0x170] sm:$0xff] }
 0x154   :  { %v201_v58 = vrot.slane %v200_v57, 2 }
 0x156   :  { %v202_v59 = vadd.f32 %v201_v58, %v200_v57  ;;  %v426_v57 = vld [vmem:[#allocation5 + $0x160] sm:$0xff] }
 0x157   :  { %v1092_v58 = vpack.c.bf16 %v426_v57, %v422_v56  ;;  %v437_v56 = vld [vmem:[#allocation5 + $0x1b8] sm:$0xff]  ;;  %v1124_v57 = vpack.c.bf16 %v428_v54, %v424_v53  ;;  %v336_v53 = vld [vmem:[#allocation2 + $0x90] sm:$0xff] }
 0x158   :  { %v203_v60 = vrot.slane %v202_v59, 1  ;;  %v340_v54 = vld [vmem:[#allocation2 + $0xb0] sm:$0xff] }
 0x15a   :  { %v204_v61 = vadd.f32 %v203_v60, %v202_v59  ;;  %v431_v59 = vld [vmem:[#allocation5 + $0x188] sm:$0xff] }
 0x15b   :  { %v435_v60 = vld [vmem:[#allocation5 + $0x1a8] sm:$0xff] }
 0x15c   :  { %v205_v62 = vmax.f32 %v204_v61, 1.0  ;;  %v1094_v61 = vpack.c.bf16 %v435_v60, %v431_v59  ;;  %v432_v59 = vld [vmem:[#allocation5 + $0x190] sm:$0xff] }
 0x15d   :  { %v436_v60 = vld [vmem:[#allocation5 + $0x1b0] sm:$0xff] }
 0x15e   :  { %1231 = vrcp.f32 %v205_v62 }
 0x168   :  { %v1232_v63 = vpop.eup %1231 }
 0x169   :  { %v207_v0 = vmul.f32 %v1232_v63, %v205_v62  ;;  %v430_v62 = vld [vmem:[#allocation5 + $0x180] sm:$0xff] }
 0x16b   :  { %v208_v3 = vsub.f32 2.0, %v207_v0 }
 0x16d   :  { %v209_v4 = vmul.f32 %v1232_v63, %v208_v3  ;;  %v434_v63 = vld [vmem:[#allocation5 + $0x1a0] sm:$0xff]  ;;  %v439_v3 = vld [vmem:[#allocation5 + $0x1c8] sm:$0xff] }
 0x16e   :  { %v1096_v0 = vpack.c.bf16 %v434_v63, %v430_v62  ;;  %v445_v62 = vld [vmem:[#allocation5 + $0x1f8] sm:$0xff]  ;;  %v1128_v63 = vpack.c.bf16 %v436_v60, %v432_v59  ;;  %v1176_v60 = vpack.c.bf16 %v340_v54, %v336_v53  ;;  %v372_v53 = vld [vmem:[#allocation2 + $0x1b0] sm:$0xff]  ;;  %v375_v54 = vld [vmem:[#allocation2 + $0x1c8] sm:$0xff] }
 0x16f   :  { %v210_v5 = vmul.f32 %v209_v4, %v194_v51  ;;  %v211_v6 = vmul.f32 %v209_v4, %v195_v52  ;;  %v418_v51 = vld [vmem:[#allocation5 + $0x120] sm:$0xff]  ;;  %v443_v4 = vld [vmem:[#allocation5 + $0x1e8] sm:$0xff] }
 0x170   :  { %v1088_v52 = vpack.c.bf16 %v418_v51, %v414_v49  ;;  %v429_v49 = vld [vmem:[#allocation5 + $0x178] sm:$0xff]  ;;  %v1120_v51 = vpack.c.bf16 %v420_v46, %v416_v45  ;;  %v1140_v45 = vpack.c.bf16 %v330_v34, %v326_v33  ;;  %v358_v34 = vld [vmem:[#allocation2 + $0x140] sm:$0xff] }
 0x171   :  { %212 = vxpose.xlu1.b32.start [1/2] (short) (narrow) %v210_v5, 8  ;;  %v1098_v5 = vpack.c.bf16 %v443_v4, %v439_v3  ;;  %v440_v3 = vld [vmem:[#allocation5 + $0x1d0] sm:$0xff] }
 0x172   :  { %1089 = vmatpush1.bf16.msra.mxu0 %v1088_v52  ;;  %v1122_v52 = vpack.c.bf16 %v429_v49, %v425_v47  ;;  %v444_v4 = vld [vmem:[#allocation5 + $0x1f0] sm:$0xff]  ;;  %v334_v47 = vld [vmem:[#allocation2 + $0x80] sm:$0xff] }
 0x173   :  { %1091 = vmatprep.subr.bf16.mxu0 %v1090_v55  ;;  %v433_v55 = vld [vmem:[#allocation5 + $0x198] sm:$0xff]  ;;  %v338_v49 = vld [vmem:[#allocation2 + $0xa0] sm:$0xff] }
 0x174   :  { %v1144_v59 = vpack.c.bf16 %v338_v49, %v334_v47  ;;  %v370_v47 = vld [vmem:[#allocation2 + $0x1a0] sm:$0xff] }
 0x175   :  { %213 = vxpose.xlu1.b32.end [2/2] (short) (narrow) %v211_v6, 8  ;;  %v438_v6 = vld [vmem:[#allocation5 + $0x1c0] sm:$0xff] }
 0x176   :  { %1093 = vmatpush1.bf16.msra.mxu0 %v1092_v58  ;;  %v1100_v8 = vpack.c.bf16 %v442_v7, %v438_v6  ;;  %v1126_v58 = vpack.c.bf16 %v437_v56, %v433_v55  ;;  %v319_v6 = vld [vmem:[#allocation2 + $0x8] sm:$0xff] }
 0x177   :  { %1095 = vmatprep.subr.bf16.mxu0 %v1094_v61  ;;  %v441_v61 = vld [vmem:[#allocation5 + $0x1d8] sm:$0xff]  ;;  %v323_v7 = vld [vmem:[#allocation2 + $0x28] sm:$0xff] }
 0x178   :  { %v1134_v9 = vpack.c.bf16 %v323_v7, %v319_v6  ;;  %v343_v55 = vld [vmem:[#allocation2 + $0xc8] sm:$0xff]  ;;  %v353_v7 = vld [vmem:[#allocation2 + $0x118] sm:$0xff] }
 0x179   :  { %v347_v56 = vld [vmem:[#allocation2 + $0xe8] sm:$0xff] }
 0x17a   :  { %1097 = vmatpush1.bf16.msra.mxu0 %v1096_v0  ;;  %v1130_v0 = vpack.c.bf16 %v445_v62, %v441_v61  ;;  %v342_v61 = vld [vmem:[#allocation2 + $0xc0] sm:$0xff]  ;;  %v355_v6 = vld [vmem:[#allocation2 + $0x128] sm:$0xff] }
 0x17b   :  { %1099 = vmatprep.subr.bf16.mxu0 %v1098_v5  ;;  %v1132_v5 = vpack.c.bf16 %v444_v4, %v440_v3  ;;  %v346_v62 = vld [vmem:[#allocation2 + $0xe0] sm:$0xff]  ;;  %v344_v3 = vld [vmem:[#allocation2 + $0xd0] sm:$0xff] }
 0x17c   :  { %v348_v4 = vld [vmem:[#allocation2 + $0xf0] sm:$0xff] }
 0x17e   :  { %1101 = vmatpush1.bf16.msra.mxu0 %v1100_v8  ;;  %v321_v8 = vld [vmem:[#allocation2 + $0x18] sm:$0xff] }
 0x17f   :  { %v1166_v11 = vpack.c.bf16 %v325_v10, %v321_v8  ;;  %1135 = vmatprep.subr.bf16.mxu0 %v1134_v9  ;;  %v357_v8 = vld [vmem:[#allocation2 + $0x138] sm:$0xff]  ;;  %v1148_v9 = vpack.c.bf16 %v346_v62, %v342_v61  ;;  %v1180_v10 = vpack.c.bf16 %v348_v4, %v344_v3  ;;  %v380_v3 = vld [vmem:[#allocation2 + $0x1f0] sm:$0xff] }
 0x1f1   :  { %v228_v20 = vpop.trf.xlu1 }
 0x1f2   :  { %1053 = vmatmul.mubr.msk.f32.vlgmr.msra.gmra.mrb[0].mxu1 %vm244_vm4, %v228_v20  ;;  %v331_v20 = vld [vmem:[#allocation2 + $0x68] sm:$0xff] }
 0x1f3   :  { %1105 = vmatpush1.bf16.msra.mxu1 %v1104_v13  ;;  %581 = vmatprep.mubr.f32.mxu1 %v1332_v24  ;;  %v322_v13 = vld [vmem:[#allocation2 + $0x20] sm:$0xff]  ;;  %v1138_v35 = vpack.c.bf16 %v331_v20, %v327_v18  ;;  %v356_v18 = vld [vmem:[#allocation2 + $0x130] sm:$0xff]  ;;  %v359_v20 = vld [vmem:[#allocation2 + $0x148] sm:$0xff] }
 0x1f4   :  { %1107 = vmatprep.subr.bf16.mxu1 %v1106_v14  ;;  %v320_v14 = vld [vmem:[#allocation2 + $0x10] sm:$0xff] }
 0x1f7   :  { %1109 = vmatpush1.bf16.msra.mxu1 %v1108_v31  ;;  %v1136_v31 = vpack.c.bf16 %v322_v13, %v318_v12  ;;  %v354_v12 = vld [vmem:[#allocation2 + $0x120] sm:$0xff] }
 0x1f8   :  { %1111 = vmatprep.subr.bf16.mxu1 %v1110_v32  ;;  %v1168_v32 = vpack.c.bf16 %v324_v16, %v320_v14  ;;  %v1182_v14 = vpack.c.bf16 %v357_v8, %v353_v7  ;;  %v352_v16 = vld [vmem:[#allocation2 + $0x110] sm:$0xff]  ;;  %v733_v7 = vrot.slane %v1393_v1, %v1416_v19 }
 0x1f9   :  { %v1184_v33 = vpack.c.bf16 %v356_v18, %v352_v16 }
 0x1fb   :  { %1113 = vmatpush1.bf16.msra.mxu1 %v1112_v37  ;;  %v328_v37 = vld [vmem:[#allocation2 + $0x50] sm:$0xff] }
 0x1fc   :  { %1115 = vmatprep.subr.bf16.mxu1 %v1114_v38  ;;  %v332_v38 = vld [vmem:[#allocation2 + $0x70] sm:$0xff] }
 0x1fd   :  { %v1172_v46 = vpack.c.bf16 %v332_v38, %v328_v37  ;;  %v360_v38 = vld [vmem:[#allocation2 + $0x150] sm:$0xff] }
 0x1ff   :  { %1117 = vmatpush1.bf16.msra.mxu1 %v1116_v43  ;;  %v341_v43 = vld [vmem:[#allocation2 + $0xb8] sm:$0xff] }
 0x200   :  { %1119 = vmatprep.subr.bf16.mxu1 %v1118_v44 }
 0x203   :  { %1121 = vmatpush1.bf16.msra.mxu1 %v1120_v51  ;;  %v1142_v51 = vpack.c.bf16 %v339_v41, %v335_v39  ;;  %v364_v39 = vld [vmem:[#allocation2 + $0x170] sm:$0xff]  ;;  %v371_v41 = vld [vmem:[#allocation2 + $0x1a8] sm:$0xff] }
 0x204   :  { %1123 = vmatprep.subr.bf16.mxu1 %v1122_v52  ;;  %v1174_v52 = vpack.c.bf16 %v341_v43, %v337_v42  ;;  %v369_v42 = vld [vmem:[#allocation2 + $0x198] sm:$0xff] }
 0x205   :  { %v373_v43 = vld [vmem:[#allocation2 + $0x1b8] sm:$0xff] }
 0x207   :  { %1125 = vmatpush1.bf16.msra.mxu1 %v1124_v57  ;;  %v345_v57 = vld [vmem:[#allocation2 + $0xd8] sm:$0xff] }
 0x208   :  { %1127 = vmatprep.subr.bf16.mxu1 %v1126_v58  ;;  %v349_v58 = vld [vmem:[#allocation2 + $0xf8] sm:$0xff] }
 0x20b   :  { %1129 = vmatpush1.bf16.msra.mxu1 %v1128_v63  ;;  %v1146_v63 = vpack.c.bf16 %v347_v56, %v343_v55  ;;  %v379_v55 = vld [vmem:[#allocation2 + $0x1e8] sm:$0xff]  ;;  %v377_v56 = vld [vmem:[#allocation2 + $0x1d8] sm:$0xff] }
 0x20c   :  { %1131 = vmatprep.subr.bf16.mxu1 %v1130_v0  ;;  %v1178_v0 = vpack.c.bf16 %v349_v58, %v345_v57  ;;  %v381_v57 = vld [vmem:[#allocation2 + $0x1f8] sm:$0xff]  ;;  %v1162_v61 = vpack.c.bf16 %v379_v55, %v375_v54 }
 0x20d   :  { %v1194_v62 = vpack.c.bf16 %v381_v57, %v377_v56 }
 0x20f   :  { %1133 = vmatpush1.bf16.msra.mxu1 %v1132_v5  ;;  %v351_v5 = vld [vmem:[#allocation2 + $0x108] sm:$0xff] }
 0x210   :  { %1167 = vmatprep.subr.bf16.mxu1 %v1166_v11  ;;  %v350_v11 = vld [vmem:[#allocation2 + $0x100] sm:$0xff]  ;;  %v1150_v13 = vpack.c.bf16 %v355_v6, %v351_v5  ;;  %v736_v6 = vsub.s32 1, %v1413_v17 }
 0x212   :  { %v737_v8 = vrot.slane %v1393_v1, %v736_v6 }
 0x2c5   :  { %v314_v40 = vpop.f32.mrb[0].mxu1 }
 0x2c6   :  { %v1054_v44 = vpop.f32.mrb[1].mxu1  ;;  %511 = vmatmul.mubr.f32.vlgmr.msra.gmra.mrb[2].mxu0 %v314_v40  ;;  %582 = vmatmul.mubr.f32.vlgmr.msra.gmra.mrb[2].mxu1 %v314_v40  ;;  %v367_v40 = vld [vmem:[#allocation2 + $0x188] sm:$0xff] }
 0x2c7   :  { %1137 = vmatpush1.bf16.msra.mxu0 %v1136_v31  ;;  %1169 = vmatpush1.bf16.msra.mxu1 %v1168_v32  ;;  %v365_v31 = vld [vmem:[#allocation2 + $0x178] sm:$0xff]  ;;  %v1152_v32 = vpack.c.bf16 %v354_v12, %v350_v11  ;;  %v1158_v49 = vpack.c.bf16 %v371_v41, %v367_v40 }
 0x2c8   :  { %1139 = vmatprep.subr.bf16.mxu0 %v1138_v35  ;;  %1171 = vmatprep.subr.bf16.mxu1 %v1170_v36  ;;  %v362_v35 = vld [vmem:[#allocation2 + $0x160] sm:$0xff]  ;;  %v1154_v36 = vpack.c.bf16 %v363_v21, %v359_v20  ;;  %v1186_v37 = vpack.c.bf16 %v365_v31, %v361_v30 }
 0x2c9   :  { %652 = vmatprep.mubr.f32.mxu0 %v1332_v24  ;;  %723 = vmatprep.mubr.f32.mxu1 %v1332_v24  ;;  %v1156_v44 = vpack.c.bf16 %v362_v35, %v358_v34  ;;  %v93_v35 = vrot.slane %v1410_v15, %v1416_v19 }
 0x2cb   :  { %1141 = vmatpush1.bf16.msra.mxu0 %v1140_v45  ;;  %1173 = vmatpush1.bf16.msra.mxu1 %v1172_v46  ;;  %v1188_v45 = vpack.c.bf16 %v364_v39, %v360_v38  ;;  %v366_v46 = vld [vmem:[#allocation2 + $0x180] sm:$0xff] }
 0x2cc   :  { %1143 = vmatprep.subr.bf16.mxu0 %v1142_v51  ;;  %1175 = vmatprep.subr.bf16.mxu1 %v1174_v52  ;;  %v1190_v51 = vpack.c.bf16 %v373_v43, %v369_v42  ;;  %v368_v52 = vld [vmem:[#allocation2 + $0x190] sm:$0xff]  ;;  %v1160_v58 = vpack.c.bf16 %v370_v47, %v366_v46 }
 0x2cf   :  { %1145 = vmatpush1.bf16.msra.mxu0 %v1144_v59  ;;  %1177 = vmatpush1.bf16.msra.mxu1 %v1176_v60  ;;  %v1192_v59 = vpack.c.bf16 %v372_v53, %v368_v52  ;;  %v374_v60 = vld [vmem:[#allocation2 + $0x1c0] sm:$0xff] }
 0x2d0   :  { %1147 = vmatprep.subr.bf16.mxu0 %v1146_v63  ;;  %1179 = vmatprep.subr.bf16.mxu1 %v1178_v0  ;;  %v378_v63 = vld [vmem:[#allocation2 + $0x1e0] sm:$0xff]  ;;  %v376_v0 = vld [vmem:[#allocation2 + $0x1d0] sm:$0xff] }
 0x2d1   :  { %v1164_v4 = vpack.c.bf16 %v378_v63, %v374_v60  ;;  %v1196_v5 = vpack.c.bf16 %v380_v3, %v376_v0 }
 0x2d3   :  { %1149 = vmatpush1.bf16.msra.mxu0 %v1148_v9  ;;  %1181 = vmatpush1.bf16.msra.mxu1 %v1180_v10  ;;  %v744_v10 = vsub.s32 3, %v1413_v17 }
 0x2d4   :  { %1151 = vmatprep.subr.bf16.mxu0 %v1150_v13  ;;  %1183 = vmatprep.subr.bf16.mxu1 %v1182_v14 }
 0x2d5   :  { %v745_v14 = vrot.slane %v1393_v1, %v744_v10 }
 0x2d7   :  { %1153 = vmatpush1.bf16.msra.mxu0 %v1152_v32  ;;  %1185 = vmatpush1.bf16.msra.mxu1 %v1184_v33 }
 0x2d8   :  { %1155 = vmatprep.subr.bf16.mxu0 %v1154_v36  ;;  %1187 = vmatprep.subr.bf16.mxu1 %v1186_v37 }
 0x2db   :  { %1157 = vmatpush1.bf16.msra.mxu0 %v1156_v44  ;;  %1189 = vmatpush1.bf16.msra.mxu1 %v1188_v45 }
 0x2dc   :  { %1159 = vmatprep.subr.bf16.mxu0 %v1158_v49  ;;  %1191 = vmatprep.subr.bf16.mxu1 %v1190_v51 }
 0x2df   :  { %1161 = vmatpush1.bf16.msra.mxu0 %v1160_v58  ;;  %1193 = vmatpush1.bf16.msra.mxu1 %v1192_v59 }
 0x2e0   :  { %1163 = vmatprep.subr.bf16.mxu0 %v1162_v61  ;;  %1195 = vmatprep.subr.bf16.mxu1 %v1194_v62 }
 0x2e3   :  { %1165 = vmatpush1.bf16.msra.mxu0 %v1164_v4  ;;  %1197 = vmatpush1.bf16.msra.mxu1 %v1196_v5 }
 0x2e4   :  { %1198 = vmatprep.subr.bf16.mxu1 %v1333_v26 }
 0x2e6   :  { %653 = vmatmul.mubr.f32.vlgmr.msra.gmra.mrb[2].mxu0 %v1419_v22  ;;  %724 = vmatmul.mubr.f32.vlgmr.msra.gmra.mrb[2].mxu1 %v1419_v22 }
 0x2e7   :  { %1057 = vmatprep.mubr.f32.mxu0 %v1398_v2  ;;  %1200 = vmatpush3.bf16.msra.mxu1 %v1432_v25 }
 0x2e8   :  { %1064 = vmatprep.mubr.msk.f32.mxu1 %vm1334_vm0, %v1332_v24  ;;  %v740_v24 = vsub.s32 2, %v1413_v17 }
 0x2ea   :  { %v741_v18 = vrot.slane %v1393_v1, %v740_v24 }
 0x3b9   :  { %v654_v9 = vpop.f32.mrb[2].mxu0  ;;  %v725_v26 = vpop.f32.mrb[2].mxu1 }
 0x3ba   :  { %v750_v11 = vadd.f32 %v733_v7, %v654_v9  ;;  %v656_v22 = vpop.f32.mrb[3].mxu0  ;;  %v727_v12 = vpop.f32.mrb[3].mxu1  ;;  %v752_v21 = vadd.f32 %v741_v18, %v725_v26 }
 0x3bb   :  { %v751_v2 = vadd.f32 %v737_v8, %v656_v22  ;;  %v753_v16 = vadd.f32 %v745_v14, %v727_v12 }
 0x3bc   :  { %v1026_v13 = vmul.f32 -1.442695, %v750_v11 }
 0x3bd   :  { %v1027_v25 = vmul.f32 -1.442695, %v751_v2  ;;  %v1028_v20 = vmul.f32 -1.442695, %v753_v16 }
 0x3be   :  { %1233 = vpow2.f32 %v1026_v13 }
 0x3bf   :  { %1235 = vpow2.f32 %v1027_v25 }
 0x3c0   :  { %1237 = vpow2.f32 %v1028_v20 }
 0x3c1   :  { %1239 = vtanh.f32 %v752_v21 }
 0x3c8   :  { %v1234_v30 = vpop.eup %1233 }
 0x3c9   :  { %v1236_v31 = vpop.eup %1235  ;;  %v757_v32 = vadd.f32 1.0, %v1234_v30 }
 0x3ca   :  { %v763_v33 = vadd.f32 1.0, %v1236_v31  ;;  %v1238_v34 = vpop.eup %1237 }
 0x3cb   :  { %1241 = vrcp.f32 %v757_v32  ;;  %v1240_v36 = vpop.eup %1239  ;;  %v770_v39 = vadd.f32 1.0, %v1238_v34 }
 0x3cc   :  { %1243 = vrcp.f32 %v763_v33 }
 0x3cd   :  { %1245 = vrcp.f32 %v770_v39 }
 0x3d5   :  { %v1242_v17 = vpop.eup %1241 }
 0x3d6   :  { %v1244_v37 = vpop.eup %1243  ;;  %v774_v38 = vmul.f32 %v1242_v17, %v1240_v36 }
 0x3d7   :  { %v773_v1 = vmul.f32 %v1244_v37, %v93_v35  ;;  %v1246_v41 = vpop.eup %1245 }
 0x3d9   :  { %v775_v40 = vadd.f32 %v774_v38, %v773_v1 }
 0x3db   :  { %1247 = vtanh.f32 %v775_v40 }
 0x3e5   :  { %v1248_v42 = vpop.eup %1247 }
 0x3e6   :  { %v777_v43 = vmul.f32 %v1248_v42, %v1246_v41 }
 0x3e8   :  { %1055 = vmatprep.subr.mxu0 %v777_v43 }
 0x3e9   :  { %1056 = vmatpush3.xpose.msra.mxu0 %v777_v43 }
 0x3ec   :  { %1058 = vmatmul.mubr.f32.vlgmr.msra.gmra.mrb[4].mxu0 %v1426_v23 }
 0x4bf   :  { %v1059_v44 = vpop.f32.mrb[4].mxu0 }
 0x4c0   :  { %v854_v15 = vsel %vm63_vm2, %v1059_v44, -1e+30  ;;  %v844_v19 = vpop.f32.mrb[5].mxu0 }
 0x4c1   :  { %v856_v45 = vsel %vm178_vm1, %v854_v15, -inf  ;;  %v853_v46 = vsel %vm62_vm3, %v844_v19, -1e+30 }
 0x4c2   :  { %v855_v47 = vsel %vm178_vm1, %v853_v46, -inf }
 0x4c3   :  { %v857_v49 = vmax.f32 %v855_v47, %v856_v45 }
 0x4c5   :  { %v858_v51 = vrot.slane %v857_v49, 4 }
 0x4c7   :  { %v859_v52 = vmax.f32 %v857_v49, %v858_v51 }
 0x4c9   :  { %v860_v53 = vrot.slane %v859_v52, 2 }
 0x4cb   :  { %v861_v54 = vmax.f32 %v859_v52, %v860_v53 }
 0x4cd   :  { %v862_v23 = vrot.slane %v861_v54, 1 }
 0x4cf   :  { %v863_v55 = vmax.f32 %v861_v54, %v862_v23 }
 0x4d1   :  { %v864_v56 = vsub.f32 %v853_v46, %v863_v55  ;;  %v865_v57 = vsub.f32 %v854_v15, %v863_v55 }
 0x4d3   :  { %v866_v29 = vmul.f32 1.442695, %v864_v56  ;;  %v868_v58 = vmul.f32 1.442695, %v865_v57 }
 0x4d5   :  { %1249 = vpow2.f32 %v866_v29 }
 0x4d6   :  { %1251 = vpow2.f32 %v868_v58 }
 0x4df   :  { %v1250_v59 = vpop.eup %1249 }
 0x4e0   :  { %v1252_v60 = vpop.eup %1251  ;;  %v870_v27 = vmul.f32 %v1250_v59, %v1460_v48 }
 0x4e1   :  { %v871_v28 = vmul.f32 %v1252_v60, %v1466_v50 }
 0x4e2   :  { %v872_v61 = vsel %vm178_vm1, %v870_v27, 0.0 }
 0x4e3   :  { %v873_v62 = vsel %vm178_vm1, %v871_v28, 0.0 }
 0x4e4   :  { %v874_v63 = vadd.f32 %v873_v62, %v872_v61 }
 0x4e6   :  { %v875_v0 = vrot.slane %v874_v63, 4 }
 0x4e8   :  { %v876_v3 = vadd.f32 %v875_v0, %v874_v63 }
 0x4ea   :  { %v877_v4 = vrot.slane %v876_v3, 2 }
 0x4ec   :  { %v878_v5 = vadd.f32 %v877_v4, %v876_v3 }
 0x4ee   :  { %v879_v6 = vrot.slane %v878_v5, 1 }
 0x4f0   :  { %v880_v7 = vadd.f32 %v879_v6, %v878_v5 }
 0x4f2   :  { %v881_v8 = vmax.f32 %v880_v7, 1.0 }
 0x4f4   :  { %1253 = vrcp.f32 %v881_v8 }
 0x4fe   :  { %v1254_v9 = vpop.eup %1253 }
 0x4ff   :  { %v883_v26 = vmul.f32 %v1254_v9, %v881_v8 }
 0x501   :  { %v884_v10 = vsub.f32 2.0, %v883_v26 }
 0x503   :  { %v885_v11 = vmul.f32 %v1254_v9, %v884_v10 }
 0x505   :  { %v886_v48 = vmul.f32 %v885_v11, %v870_v27  ;;  %v887_v22 = vmul.f32 %v885_v11, %v871_v28 }
 0x507   :  { %888 = vxpose.xlu0.b32.start [1/2] (short) (narrow) %v886_v48, 8 }
 0x50b   :  { %889 = vxpose.xlu0.b32.end [2/2] (short) (narrow) %v887_v22, 8 }
 0x587   :  { %v904_v50 = vpop.trf.xlu0 }
 0x588   :  { %1065 = vmatmul.mubr.msk.f32.vlgmr.msra.gmra.mrb[4].mxu1 %vm244_vm4, %v904_v50 }
 0x65b   :  { %v989_v12 = vpop.f32.mrb[4].mxu1 }
 0x65c   :  { %v995_v2 = vcombine.low %v777_v43, %v989_v12  ;;  %v1066_v13 = vpop.f32.mrb[5].mxu1 }
 0x65e   :  { %1030 = vst.sshfl [vmem:[#allocation7] sm:$0x33 pattern:$0x76325410] %v995_v2 }
 0x65f   :  { %1310 = shalt.err (!%p1307_p6)
}
 0x660   :  { %s1311_s29 = scalar_lea.hbm %s1524_s5, 64 }
 0x661   :  { %p1312_p7 = scmp.ne.s32.totalorder %s1524_s5, %s1311_s29  ;;  %p1315_p8 = scmp.lt.u32.totalorder %s1311_s29, %s1524_s5 }
 0x663   :  { %p1317_p9 = pnand %p1315_p8, %p1312_p7 }
 0x665   :  { %1320 = shalt.err (!%p1317_p9)
}
 0x666   :  { %1014 = dma.vmem_to_hbm [thread:$0]  %s1012_s25, 64, %s1524_s5, [#allocation4]  }
 0x667   :  { %1325 = dma.done.wait [#allocation4], 64  }
 0x668   :  { %1326 = vsyncadd [#allocation4], 4294967232 }
 0x669   :  { %1018 = vsyncpa [#allocation3], 1 }
 0x66a   :  { %1019 = vsyncpa [#allocation6], 1 }
 0x66b   :  { %1020 = vsyncpa [#allocation4], 1 }

</bundles_post_ra>
